<compile_context>
chip_gen: v5e
topology: v5e:2x2
jax: 0.10.0
libtpu: 0.0.40
codegen_flags: <defaults>
</compile_context>

<pallas_src>
import functools
import math

import jax
import jax.numpy as jnp
from jax.experimental import pallas as pl
from jax.experimental.pallas import tpu as pltpu


def _gelu_tanh(x):
    # tanh-form GELU: exp/tanh run on the EUP slot (VALU stays free).
    c = math.sqrt(2.0 / math.pi)
    return 0.5 * x * (1.0 + jnp.tanh(c * (x + 0.044715 * x * x * x)))


def _layer_norm(x, gamma, beta, eps):
    # PyTorch nn.LayerNorm semantics: biased variance, eps inside the sqrt.
    mean = jnp.mean(x, axis=-1, keepdims=True)
    xc = x - mean
    var = jnp.mean(xc * xc, axis=-1, keepdims=True)
    return xc * jax.lax.rsqrt(var + eps) * gamma + beta


def encoder_layer_kernel(x_ref,
                         wq_ref, bq_ref, wk_ref, bk_ref, wv_ref, bv_ref,
                         wo_ref, bo_ref, ln1_g_ref, ln1_b_ref,
                         w1_ref, b1_ref, w2_ref, b2_ref, ln2_g_ref, ln2_b_ref,
                         out_ref, attn_ref,
                         *, n_heads, d_dim, eps, compute_dtype):
    bt, S, D = x_ref.shape
    H, dd = n_heads, d_dim
    R = bt * S                                     # MXU rows per grid step

    # ---- load & hoist once per grid step -----------------------------------
    x = x_ref[...]                                  # (bt, S, D) f32
    rows = x.reshape(R, D)
    rows_c = rows.astype(compute_dtype)

    # Weights arrive pre-cast to the compute dtype (bf16) from the wrapper.
    wq = wq_ref[...]
    wk = wk_ref[...]
    wv = wv_ref[...]
    wo = wo_ref[...]
    w1 = w1_ref[...]
    w2 = w2_ref[...]

    # ---- QKV projections: wide MXU matmuls over all rows, f32 accumulate ---
    qs = jnp.dot(rows_c, wq, preferred_element_type=jnp.float32) + bq_ref[...]
    ks = jnp.dot(rows_c, wk, preferred_element_type=jnp.float32) + bk_ref[...]
    vs = jnp.dot(rows_c, wv, preferred_element_type=jnp.float32) + bv_ref[...]

    # Fold 1/sqrt(d_k) into Q once (not per (S, S) score tile).
    qs = qs * (1.0 / math.sqrt(dd))

    q3 = qs.astype(compute_dtype).reshape(bt, S, H * dd)
    k3 = ks.astype(compute_dtype).reshape(bt, S, H * dd)
    v3 = vs.astype(compute_dtype).reshape(bt, S, H * dd)

    # ---- per-head attention, batch folded into the einsum batch dim --------
    ctx_heads = []
    for h in range(H):                              # static, H is small
        lo = h * dd
        q_h = q3[:, :, lo:lo + dd]                  # (bt, S, dd)
        k_h = k3[:, :, lo:lo + dd]
        v_h = v3[:, :, lo:lo + dd]

        # Scores: contract last dims (no materialized k.T), f32 accumulation.
        s_h = jnp.einsum('bqd,bkd->bqk', q_h, k_h,
                         preferred_element_type=jnp.float32)   # (bt, S, S)

        # Softmax in f32; divide on the EUP via approximate reciprocal.
        m_h = jnp.max(s_h, axis=-1, keepdims=True)
        e_h = jnp.exp(s_h - m_h)
        denom = jnp.sum(e_h, axis=-1, keepdims=True)
        a_h = e_h * pl.reciprocal(denom, approx=True)

        # Contiguous per-head store of the attention probabilities.
        attn_ref[:, h, :, :] = a_h.astype(attn_ref.dtype)

        ctx_heads.append(
            jnp.einsum('bqk,bkd->bqd', a_h.astype(compute_dtype), v_h,
                       preferred_element_type=jnp.float32).astype(compute_dtype))

    # ---- output projection: ONE wide (R, H*dd) @ (H*dd, D) matmul ----------
    ctx = jnp.concatenate(ctx_heads, axis=-1).reshape(R, H * dd)
    proj = jnp.dot(ctx, wo, preferred_element_type=jnp.float32) + bo_ref[...]

    # ---- residual + LayerNorm 1 (f32) ---------------------------------------
    h1 = _layer_norm(proj + rows, ln1_g_ref[...], ln1_b_ref[...], eps)

    # ---- position-wise FFN: fc1 -> gelu(tanh) -> fc2 + residual + LN2 -------
    f = jnp.dot(h1.astype(compute_dtype), w1,
                preferred_element_type=jnp.float32) + b1_ref[...]
    f = _gelu_tanh(f)
    f2 = jnp.dot(f.astype(compute_dtype), w2,
                 preferred_element_type=jnp.float32) + b2_ref[...]
    h2 = _layer_norm(f2 + h1, ln2_g_ref[...], ln2_b_ref[...], eps)

    out_ref[...] = h2.reshape(bt, S, D).astype(out_ref.dtype)


def encoder_layer(x, params, *, n_heads, d_dim, batch_tile=None,
                  compute_dtype=jnp.bfloat16, attn_dtype=jnp.bfloat16):
    B, S, D = x.shape
    H = n_heads
    Hdd = H * d_dim
    d_ff = params["w1"].shape[1]

    # Batch tile: target >=256 MXU rows per grid step (256-wide v6e/v7x MXU),
    # but keep at least 2 grid steps when B > 1 so both TensorCores of a v7x
    # chip get work on the "parallel" axis.
    if batch_tile is None:
        row_target = 256
        cap = B if B == 1 else max(1, B // 2)
        divisors = [d for d in range(1, cap + 1) if B % d == 0]
        bt = divisors[-1]
        for d in divisors:
            if d * S >= row_target:
                bt = d
                break
    else:
        bt = batch_tile
    assert B % bt == 0, "batch must be divisible by the batch tile"

    # Pre-cast weight matrices to the compute dtype once on the host
    # (halves weight DMA bytes and removes per-step VPU casts).
    wq = params["wq"].astype(compute_dtype)
    wk = params["wk"].astype(compute_dtype)
    wv = params["wv"].astype(compute_dtype)
    wo = params["wo"].astype(compute_dtype)
    w1 = params["w1"].astype(compute_dtype)
    w2 = params["w2"].astype(compute_dtype)

    kernel = functools.partial(encoder_layer_kernel, n_heads=H, d_dim=d_dim,
                               eps=1e-5, compute_dtype=compute_dtype)

    full2 = lambda i: (0, 0)

    # Advisory cost hint for the XLA scheduler.
    flops = int(2 * B * S * D * 3 * Hdd            # QKV projections
                + 2 * B * H * S * S * d_dim * 2    # scores + attn @ V
                + 2 * B * S * Hdd * D              # output projection
                + 2 * B * S * D * d_ff * 2)        # fc1 + fc2
    transcendentals = int(B * H * S * S + B * S * d_ff)
    cdt = jnp.dtype(compute_dtype).itemsize
    adt = jnp.dtype(attn_dtype).itemsize
    weight_bytes = cdt * (3 * D * Hdd + Hdd * D + 2 * D * d_ff)
    param_bytes = 4 * (3 * Hdd + 6 * D + d_ff)
    bytes_accessed = int(4 * 2 * B * S * D + adt * B * H * S * S
                         + weight_bytes + param_bytes)

    # Scoped-VMEM limit from the actual footprint (+ generous headroom).
    block_bytes = 4 * 2 * bt * S * D + adt * bt * H * S * S
    act_bytes = ((4 + cdt) * bt * S * (4 * Hdd + 2 * d_ff + 4 * D)
                 + (4 + cdt) * bt * H * S * S)
    vmem_limit = int(min(128 * 1024 * 1024,
                         max(32 * 1024 * 1024,
                             2 * (weight_bytes + param_bytes + block_bytes)
                             + 2 * act_bytes)))

    out, attn = pl.pallas_call(
        kernel,
        out_shape=(
            jax.ShapeDtypeStruct((B, S, D), jnp.float32),
            jax.ShapeDtypeStruct((B, H, S, S), attn_dtype),
        ),
        grid_spec=pltpu.PrefetchScalarGridSpec(
            num_scalar_prefetch=0,
            grid=(B // bt,),
            in_specs=[
                pl.BlockSpec((bt, S, D), lambda i: (i, 0, 0)),      # x
                pl.BlockSpec((D, Hdd), full2),                      # W_Q (bf16)
                pl.BlockSpec((1, Hdd), full2),                      # b_Q
                pl.BlockSpec((D, Hdd), full2),                      # W_K (bf16)
                pl.BlockSpec((1, Hdd), full2),                      # b_K
                pl.BlockSpec((D, Hdd), full2),                      # W_V (bf16)
                pl.BlockSpec((1, Hdd), full2),                      # b_V
                pl.BlockSpec((Hdd, D), full2),                      # W_O (bf16)
                pl.BlockSpec((1, D), full2),                        # b_O
                pl.BlockSpec((1, D), full2),                        # LN1 gamma
                pl.BlockSpec((1, D), full2),                        # LN1 beta
                pl.BlockSpec((D, d_ff), full2),                     # FFN W1 (bf16)
                pl.BlockSpec((1, d_ff), full2),                     # FFN b1
                pl.BlockSpec((d_ff, D), full2),                     # FFN W2 (bf16)
                pl.BlockSpec((1, D), full2),                        # FFN b2
                pl.BlockSpec((1, D), full2),                        # LN2 gamma
                pl.BlockSpec((1, D), full2),                        # LN2 beta
            ],
            out_specs=[
                pl.BlockSpec((bt, S, D), lambda i: (i, 0, 0)),
                pl.BlockSpec((bt, H, S, S), lambda i: (i, 0, 0, 0)),
            ],
        ),
        compiler_params=pltpu.CompilerParams(
            dimension_semantics=("parallel",),
            vmem_limit_bytes=vmem_limit),
        cost_estimate=pl.CostEstimate(
            flops=flops, transcendentals=transcendentals,
            bytes_accessed=bytes_accessed),
    )(x,
      wq, params["bq"], wk, params["bk"], wv, params["bv"],
      wo, params["bo"],
      params["gamma1"], params["beta1"],
      w1, params["b1"], w2, params["b2"],
      params["gamma2"], params["beta2"])
    return out, attn


def reference_encoder_layer(x, params, *, n_heads, d_dim):
    """Plain-JAX f32 reference mirroring the PyTorch EncoderLayer."""
    B, S, D = x.shape
    H = n_heads
    qs = (x @ params["wq"] + params["bq"]).reshape(B, S, H, d_dim)
    ks = (x @ params["wk"] + params["bk"]).reshape(B, S, H, d_dim)
    vs = (x @ params["wv"] + params["bv"]).reshape(B, S, H, d_dim)
    qs, ks, vs = (jnp.transpose(t, (0, 2, 1, 3)) for t in (qs, ks, vs))
    scores = jnp.einsum("bhqd,bhkd->bhqk", qs, ks) / math.sqrt(d_dim)
    attn = jax.nn.softmax(scores, axis=-1)
    ctx = jnp.einsum("bhqk,bhkd->bhqd", attn, vs)
    ctx = jnp.transpose(ctx, (0, 2, 1, 3)).reshape(B, S, H * d_dim)
    out = ctx @ params["wo"] + params["bo"]

    def ln(v, g, b):
        mu = jnp.mean(v, axis=-1, keepdims=True)
        var = jnp.mean((v - mu) ** 2, axis=-1, keepdims=True)
        return (v - mu) / jnp.sqrt(var + 1e-5) * g + b

    h1 = ln(out + x, params["gamma1"], params["beta1"])
    f = h1 @ params["w1"] + params["b1"]
    f = f * 0.5 * (1.0 + jax.lax.erf(f / math.sqrt(2.0)))
    h2 = ln(f @ params["w2"] + params["b2"] + h1,
            params["gamma2"], params["beta2"])
    return h2, attn


if __name__ == "__main__":
    # Small shapes consistent with the module's forward.
    B, S, d_model, n_heads, d_dim, d_ff = 2, 8, 32, 4, 8, 64

    key = jax.random.PRNGKey(0)
    keys = jax.random.split(key, 16)

    def init(k, shape, scale=0.1):
        return (scale * jax.random.normal(k, shape)).astype(jnp.float32)

    params = {
        "wq": init(keys[0], (d_model, n_heads * d_dim)),
        "bq": init(keys[1], (1, n_heads * d_dim)),
        "wk": init(keys[2], (d_model, n_heads * d_dim)),
        "bk": init(keys[3], (1, n_heads * d_dim)),
        "wv": init(keys[4], (d_model, n_heads * d_dim)),
        "bv": init(keys[5], (1, n_heads * d_dim)),
        "wo": init(keys[6], (n_heads * d_dim, d_model)),
        "bo": init(keys[7], (1, d_model)),
        "gamma1": jnp.ones((1, d_model), jnp.float32),
        "beta1": jnp.zeros((1, d_model), jnp.float32),
        "w1": init(keys[8], (d_model, d_ff)),
        "b1": init(keys[9], (1, d_ff)),
        "w2": init(keys[10], (d_ff, d_model)),
        "b2": init(keys[11], (1, d_model)),
        "gamma2": jnp.ones((1, d_model), jnp.float32),
        "beta2": jnp.zeros((1, d_model), jnp.float32),
    }

    x = jax.random.normal(keys[12], (B, S, d_model), jnp.float32)

    out, attn = encoder_layer(x, params, n_heads=n_heads, d_dim=d_dim)
    out = jax.block_until_ready(out)
    attn = jax.block_until_ready(attn)

    ref_out, ref_attn = reference_encoder_layer(x, params,
                                                n_heads=n_heads, d_dim=d_dim)

    assert out.shape == (B, S, d_model)
    assert attn.shape == (B, n_heads, S, S)
    attn_f32 = attn.astype(jnp.float32)
    # bf16 MXU operands + bf16 attn output + tanh-GELU + approx EUP reciprocal
    # -> slightly loosened tolerance vs the f32/erf reference.
    assert jnp.allclose(out, ref_out, atol=2e-2, rtol=2e-2), \
        float(jnp.max(jnp.abs(out - ref_out)))
    assert jnp.allclose(attn_f32, ref_attn, atol=2e-2, rtol=2e-2), \
        float(jnp.max(jnp.abs(attn_f32 - ref_attn)))

    print("KERNEL_OK")
</pallas_src>

<mosaic_0001>
module attributes {stable_mosaic.version = 11 : i64} {
  func.func @encoder_layer_kernel(%arg0: i32, %arg1: memref<1x8x32xf32, #tpu.memory_space<vmem>>, %arg2: memref<32x32xbf16, #tpu.memory_space<vmem>>, %arg3: memref<1x32xf32, #tpu.memory_space<vmem>>, %arg4: memref<32x32xbf16, #tpu.memory_space<vmem>>, %arg5: memref<1x32xf32, #tpu.memory_space<vmem>>, %arg6: memref<32x32xbf16, #tpu.memory_space<vmem>>, %arg7: memref<1x32xf32, #tpu.memory_space<vmem>>, %arg8: memref<32x32xbf16, #tpu.memory_space<vmem>>, %arg9: memref<1x32xf32, #tpu.memory_space<vmem>>, %arg10: memref<1x32xf32, #tpu.memory_space<vmem>>, %arg11: memref<1x32xf32, #tpu.memory_space<vmem>>, %arg12: memref<32x64xbf16, #tpu.memory_space<vmem>>, %arg13: memref<1x64xf32, #tpu.memory_space<vmem>>, %arg14: memref<64x32xbf16, #tpu.memory_space<vmem>>, %arg15: memref<1x32xf32, #tpu.memory_space<vmem>>, %arg16: memref<1x32xf32, #tpu.memory_space<vmem>>, %arg17: memref<1x32xf32, #tpu.memory_space<vmem>>, %arg18: memref<1x8x32xf32, #tpu.memory_space<vmem>>, %arg19: memref<1x4x8x8xbf16, #tpu.memory_space<vmem>>) attributes {dimension_semantics = [#tpu.dimension_semantics<parallel>], iteration_bounds = array<i64: 2>, scalar_prefetch = 0 : i64, scratch_operands = 0 : i64, tpu.core_type = #tpu.core_type<tc>, window_params = [{transform_indices = @transform_0, window_bounds = array<i64: 1, 8, 32>}, {pipeline_mode = #tpu.pipeline_mode<synchronous>, transform_indices = @transform_1, window_bounds = array<i64: 32, 32>}, {pipeline_mode = #tpu.pipeline_mode<synchronous>, transform_indices = @transform_2, window_bounds = array<i64: 1, 32>}, {pipeline_mode = #tpu.pipeline_mode<synchronous>, transform_indices = @transform_3, window_bounds = array<i64: 32, 32>}, {pipeline_mode = #tpu.pipeline_mode<synchronous>, transform_indices = @transform_4, window_bounds = array<i64: 1, 32>}, {pipeline_mode = #tpu.pipeline_mode<synchronous>, transform_indices = @transform_5, window_bounds = array<i64: 32, 32>}, {pipeline_mode = #tpu.pipeline_mode<synchronous>, transform_indices = @transform_6, window_bounds = array<i64: 1, 32>}, {pipeline_mode = #tpu.pipeline_mode<synchronous>, transform_indices = @transform_7, window_bounds = array<i64: 32, 32>}, {pipeline_mode = #tpu.pipeline_mode<synchronous>, transform_indices = @transform_8, window_bounds = array<i64: 1, 32>}, {pipeline_mode = #tpu.pipeline_mode<synchronous>, transform_indices = @transform_9, window_bounds = array<i64: 1, 32>}, {pipeline_mode = #tpu.pipeline_mode<synchronous>, transform_indices = @transform_10, window_bounds = array<i64: 1, 32>}, {pipeline_mode = #tpu.pipeline_mode<synchronous>, transform_indices = @transform_11, window_bounds = array<i64: 32, 64>}, {pipeline_mode = #tpu.pipeline_mode<synchronous>, transform_indices = @transform_12, window_bounds = array<i64: 1, 64>}, {pipeline_mode = #tpu.pipeline_mode<synchronous>, transform_indices = @transform_13, window_bounds = array<i64: 64, 32>}, {pipeline_mode = #tpu.pipeline_mode<synchronous>, transform_indices = @transform_14, window_bounds = array<i64: 1, 32>}, {pipeline_mode = #tpu.pipeline_mode<synchronous>, transform_indices = @transform_15, window_bounds = array<i64: 1, 32>}, {pipeline_mode = #tpu.pipeline_mode<synchronous>, transform_indices = @transform_16, window_bounds = array<i64: 1, 32>}, {transform_indices = @transform_17, window_bounds = array<i64: 1, 8, 32>}, {transform_indices = @transform_18, window_bounds = array<i64: 1, 4, 8, 8>}]} {
    %c0 = arith.constant 0 : index
    %c0_0 = arith.constant 0 : index
    %c0_1 = arith.constant 0 : index
    %0 = vector.load %arg1[%c0, %c0_0, %c0_1] : memref<1x8x32xf32, #tpu.memory_space<vmem>>, vector<1x8x32xf32>
    %1 = vector.shape_cast %0 : vector<1x8x32xf32> to vector<8x32xf32>
    %2 = arith.truncf %1 : vector<8x32xf32> to vector<8x32xbf16>
    %c0_2 = arith.constant 0 : index
    %c0_3 = arith.constant 0 : index
    %3 = vector.load %arg2[%c0_2, %c0_3] : memref<32x32xbf16, #tpu.memory_space<vmem>>, vector<32x32xbf16>
    %c0_4 = arith.constant 0 : index
    %c0_5 = arith.constant 0 : index
    %4 = vector.load %arg4[%c0_4, %c0_5] : memref<32x32xbf16, #tpu.memory_space<vmem>>, vector<32x32xbf16>
    %c0_6 = arith.constant 0 : index
    %c0_7 = arith.constant 0 : index
    %5 = vector.load %arg6[%c0_6, %c0_7] : memref<32x32xbf16, #tpu.memory_space<vmem>>, vector<32x32xbf16>
    %c0_8 = arith.constant 0 : index
    %c0_9 = arith.constant 0 : index
    %6 = vector.load %arg8[%c0_8, %c0_9] : memref<32x32xbf16, #tpu.memory_space<vmem>>, vector<32x32xbf16>
    %c0_10 = arith.constant 0 : index
    %c0_11 = arith.constant 0 : index
    %7 = vector.load %arg12[%c0_10, %c0_11] : memref<32x64xbf16, #tpu.memory_space<vmem>>, vector<32x64xbf16>
    %c0_12 = arith.constant 0 : index
    %c0_13 = arith.constant 0 : index
    %8 = vector.load %arg14[%c0_12, %c0_13] : memref<64x32xbf16, #tpu.memory_space<vmem>>, vector<64x32xbf16>
    %cst = arith.constant dense<0.000000e+00> : vector<8x32xf32>
    %9 = tpu.matmul %2, %3, %cst {dimension_numbers = #tpu.dot_dimension_numbers<[1], [0], [0], [1], [0, 0, 1, 1], [], []>} : vector<8x32xbf16>, vector<32x32xbf16>, vector<8x32xf32> -> vector<8x32xf32>
    %c0_14 = arith.constant 0 : index
    %c0_15 = arith.constant 0 : index
    %10 = vector.load %arg3[%c0_14, %c0_15] : memref<1x32xf32, #tpu.memory_space<vmem>>, vector<1x32xf32>
    %11 = vector.broadcast %10 : vector<1x32xf32> to vector<8x32xf32>
    %12 = arith.addf %9, %11 : vector<8x32xf32>
    %cst_16 = arith.constant dense<0.000000e+00> : vector<8x32xf32>
    %13 = tpu.matmul %2, %4, %cst_16 {dimension_numbers = #tpu.dot_dimension_numbers<[1], [0], [0], [1], [0, 0, 1, 1], [], []>} : vector<8x32xbf16>, vector<32x32xbf16>, vector<8x32xf32> -> vector<8x32xf32>
    %c0_17 = arith.constant 0 : index
    %c0_18 = arith.constant 0 : index
    %14 = vector.load %arg5[%c0_17, %c0_18] : memref<1x32xf32, #tpu.memory_space<vmem>>, vector<1x32xf32>
    %15 = vector.broadcast %14 : vector<1x32xf32> to vector<8x32xf32>
    %16 = arith.addf %13, %15 : vector<8x32xf32>
    %cst_19 = arith.constant dense<0.000000e+00> : vector<8x32xf32>
    %17 = tpu.matmul %2, %5, %cst_19 {dimension_numbers = #tpu.dot_dimension_numbers<[1], [0], [0], [1], [0, 0, 1, 1], [], []>} : vector<8x32xbf16>, vector<32x32xbf16>, vector<8x32xf32> -> vector<8x32xf32>
    %c0_20 = arith.constant 0 : index
    %c0_21 = arith.constant 0 : index
    %18 = vector.load %arg7[%c0_20, %c0_21] : memref<1x32xf32, #tpu.memory_space<vmem>>, vector<1x32xf32>
    %19 = vector.broadcast %18 : vector<1x32xf32> to vector<8x32xf32>
    %20 = arith.addf %17, %19 : vector<8x32xf32>
    %cst_22 = arith.constant 0.353553385 : f32
    %21 = vector.broadcast %cst_22 : f32 to vector<8x32xf32>
    %22 = arith.mulf %12, %21 : vector<8x32xf32>
    %23 = arith.truncf %22 : vector<8x32xf32> to vector<8x32xbf16>
    %24 = vector.shape_cast %23 : vector<8x32xbf16> to vector<1x8x32xbf16>
    %25 = arith.truncf %16 : vector<8x32xf32> to vector<8x32xbf16>
    %26 = vector.shape_cast %25 : vector<8x32xbf16> to vector<1x8x32xbf16>
    %27 = arith.truncf %20 : vector<8x32xf32> to vector<8x32xbf16>
    %28 = vector.shape_cast %27 : vector<8x32xbf16> to vector<1x8x32xbf16>
    %29 = vector.extract_strided_slice %24 {offsets = [0, 0, 0], sizes = [1, 8, 8], strides = [1, 1, 1]} : vector<1x8x32xbf16> to vector<1x8x8xbf16>
    %30 = vector.extract_strided_slice %26 {offsets = [0, 0, 0], sizes = [1, 8, 8], strides = [1, 1, 1]} : vector<1x8x32xbf16> to vector<1x8x8xbf16>
    %31 = vector.extract_strided_slice %28 {offsets = [0, 0, 0], sizes = [1, 8, 8], strides = [1, 1, 1]} : vector<1x8x32xbf16> to vector<1x8x8xbf16>
    "tpu.trace_start"() <{level = 10 : i32, message = "bqd,bkd->bqk"}> : () -> ()
    %cst_23 = arith.constant dense<0.000000e+00> : vector<1x8x8xf32>
    %32 = tpu.matmul %29, %30, %cst_23 {dimension_numbers = #tpu.dot_dimension_numbers<[2], [2], [1], [1], [0, 0, 0, 1, 1, 1], [0], [0]>} : vector<1x8x8xbf16>, vector<1x8x8xbf16>, vector<1x8x8xf32> -> vector<1x8x8xf32>
    "tpu.trace_stop"() : () -> ()
    %cst_24 = arith.constant dense<0xFF800000> : vector<1x8xf32>
    %33 = vector.multi_reduction <maximumf>, %32, %cst_24 [2] : vector<1x8x8xf32> to vector<1x8xf32>
    %34 = vector.shape_cast %33 : vector<1x8xf32> to vector<1x8x1xf32>
    %35 = vector.broadcast %34 : vector<1x8x1xf32> to vector<1x8x8xf32>
    %36 = arith.subf %32, %35 : vector<1x8x8xf32>
    %37 = math.exp %36 : vector<1x8x8xf32>
    %cst_25 = arith.constant dense<0.000000e+00> : vector<1x8xf32>
    %38 = vector.multi_reduction <add>, %37, %cst_25 [2] : vector<1x8x8xf32> to vector<1x8xf32>
    %39 = vector.shape_cast %38 : vector<1x8xf32> to vector<1x8x1xf32>
    %40 = tpu.reciprocal %39 {approx = true} : vector<1x8x1xf32> -> vector<1x8x1xf32>
    %41 = vector.broadcast %40 : vector<1x8x1xf32> to vector<1x8x8xf32>
    %42 = arith.mulf %37, %41 : vector<1x8x8xf32>
    %43 = arith.truncf %42 : vector<1x8x8xf32> to vector<1x8x8xbf16>
    %c0_26 = arith.constant 0 : index
    %c0_27 = arith.constant 0 : index
    %c0_28 = arith.constant 0 : index
    %c0_29 = arith.constant 0 : index
    %44 = vector.load %arg19[%c0_26, %c0_27, %c0_28, %c0_29] : memref<1x4x8x8xbf16, #tpu.memory_space<vmem>>, vector<1x1x8x8xbf16>
    %45 = vector.shape_cast %44 : vector<1x1x8x8xbf16> to vector<1x8x8xbf16>
    %46 = vector.shape_cast %43 : vector<1x8x8xbf16> to vector<1x1x8x8xbf16>
    tpu.vector_store %arg19[%c0_26, %c0_27, %c0_28, %c0_29], %46 {strides = array<i32>} : memref<1x4x8x8xbf16, #tpu.memory_space<vmem>>, vector<1x1x8x8xbf16>,
    %47 = arith.truncf %42 : vector<1x8x8xf32> to vector<1x8x8xbf16>
    "tpu.trace_start"() <{level = 10 : i32, message = "bqk,bkd->bqd"}> : () -> ()
    %cst_30 = arith.constant dense<0.000000e+00> : vector<1x8x8xf32>
    %48 = tpu.matmul %47, %31, %cst_30 {dimension_numbers = #tpu.dot_dimension_numbers<[2], [1], [1], [2], [0, 0, 0, 1, 1, 2], [0], [0]>} : vector<1x8x8xbf16>, vector<1x8x8xbf16>, vector<1x8x8xf32> -> vector<1x8x8xf32>
    "tpu.trace_stop"() : () -> ()
    %49 = arith.truncf %48 : vector<1x8x8xf32> to vector<1x8x8xbf16>
    %50 = vector.extract_strided_slice %24 {offsets = [0, 0, 8], sizes = [1, 8, 8], strides = [1, 1, 1]} : vector<1x8x32xbf16> to vector<1x8x8xbf16>
    %51 = vector.extract_strided_slice %26 {offsets = [0, 0, 8], sizes = [1, 8, 8], strides = [1, 1, 1]} : vector<1x8x32xbf16> to vector<1x8x8xbf16>
    %52 = vector.extract_strided_slice %28 {offsets = [0, 0, 8], sizes = [1, 8, 8], strides = [1, 1, 1]} : vector<1x8x32xbf16> to vector<1x8x8xbf16>
    "tpu.trace_start"() <{level = 10 : i32, message = "bqd,bkd->bqk"}> : () -> ()
    %cst_31 = arith.constant dense<0.000000e+00> : vector<1x8x8xf32>
    %53 = tpu.matmul %50, %51, %cst_31 {dimension_numbers = #tpu.dot_dimension_numbers<[2], [2], [1], [1], [0, 0, 0, 1, 1, 1], [0], [0]>} : vector<1x8x8xbf16>, vector<1x8x8xbf16>, vector<1x8x8xf32> -> vector<1x8x8xf32>
    "tpu.trace_stop"() : () -> ()
    %cst_32 = arith.constant dense<0xFF800000> : vector<1x8xf32>
    %54 = vector.multi_reduction <maximumf>, %53, %cst_32 [2] : vector<1x8x8xf32> to vector<1x8xf32>
    %55 = vector.shape_cast %54 : vector<1x8xf32> to vector<1x8x1xf32>
    %56 = vector.broadcast %55 : vector<1x8x1xf32> to vector<1x8x8xf32>
    %57 = arith.subf %53, %56 : vector<1x8x8xf32>
    %58 = math.exp %57 : vector<1x8x8xf32>
    %cst_33 = arith.constant dense<0.000000e+00> : vector<1x8xf32>
    %59 = vector.multi_reduction <add>, %58, %cst_33 [2] : vector<1x8x8xf32> to vector<1x8xf32>
    %60 = vector.shape_cast %59 : vector<1x8xf32> to vector<1x8x1xf32>
    %61 = tpu.reciprocal %60 {approx = true} : vector<1x8x1xf32> -> vector<1x8x1xf32>
    %62 = vector.broadcast %61 : vector<1x8x1xf32> to vector<1x8x8xf32>
    %63 = arith.mulf %58, %62 : vector<1x8x8xf32>
    %64 = arith.truncf %63 : vector<1x8x8xf32> to vector<1x8x8xbf16>
    %c0_34 = arith.constant 0 : index
    %c1 = arith.constant 1 : index
    %c0_35 = arith.constant 0 : index
    %c0_36 = arith.constant 0 : index
    %65 = vector.load %arg19[%c0_34, %c1, %c0_35, %c0_36] : memref<1x4x8x8xbf16, #tpu.memory_space<vmem>>, vector<1x1x8x8xbf16>
    %66 = vector.shape_cast %65 : vector<1x1x8x8xbf16> to vector<1x8x8xbf16>
    %67 = vector.shape_cast %64 : vector<1x8x8xbf16> to vector<1x1x8x8xbf16>
    tpu.vector_store %arg19[%c0_34, %c1, %c0_35, %c0_36], %67 {strides = array<i32>} : memref<1x4x8x8xbf16, #tpu.memory_space<vmem>>, vector<1x1x8x8xbf16>,
    %68 = arith.truncf %63 : vector<1x8x8xf32> to vector<1x8x8xbf16>
    "tpu.trace_start"() <{level = 10 : i32, message = "bqk,bkd->bqd"}> : () -> ()
    %cst_37 = arith.constant dense<0.000000e+00> : vector<1x8x8xf32>
    %69 = tpu.matmul %68, %52, %cst_37 {dimension_numbers = #tpu.dot_dimension_numbers<[2], [1], [1], [2], [0, 0, 0, 1, 1, 2], [0], [0]>} : vector<1x8x8xbf16>, vector<1x8x8xbf16>, vector<1x8x8xf32> -> vector<1x8x8xf32>
    "tpu.trace_stop"() : () -> ()
    %70 = arith.truncf %69 : vector<1x8x8xf32> to vector<1x8x8xbf16>
    %71 = vector.extract_strided_slice %24 {offsets = [0, 0, 16], sizes = [1, 8, 8], strides = [1, 1, 1]} : vector<1x8x32xbf16> to vector<1x8x8xbf16>
    %72 = vector.extract_strided_slice %26 {offsets = [0, 0, 16], sizes = [1, 8, 8], strides = [1, 1, 1]} : vector<1x8x32xbf16> to vector<1x8x8xbf16>
    %73 = vector.extract_strided_slice %28 {offsets = [0, 0, 16], sizes = [1, 8, 8], strides = [1, 1, 1]} : vector<1x8x32xbf16> to vector<1x8x8xbf16>
    "tpu.trace_start"() <{level = 10 : i32, message = "bqd,bkd->bqk"}> : () -> ()
    %cst_38 = arith.constant dense<0.000000e+00> : vector<1x8x8xf32>
    %74 = tpu.matmul %71, %72, %cst_38 {dimension_numbers = #tpu.dot_dimension_numbers<[2], [2], [1], [1], [0, 0, 0, 1, 1, 1], [0], [0]>} : vector<1x8x8xbf16>, vector<1x8x8xbf16>, vector<1x8x8xf32> -> vector<1x8x8xf32>
    "tpu.trace_stop"() : () -> ()
    %cst_39 = arith.constant dense<0xFF800000> : vector<1x8xf32>
    %75 = vector.multi_reduction <maximumf>, %74, %cst_39 [2] : vector<1x8x8xf32> to vector<1x8xf32>
    %76 = vector.shape_cast %75 : vector<1x8xf32> to vector<1x8x1xf32>
    %77 = vector.broadcast %76 : vector<1x8x1xf32> to vector<1x8x8xf32>
    %78 = arith.subf %74, %77 : vector<1x8x8xf32>
    %79 = math.exp %78 : vector<1x8x8xf32>
    %cst_40 = arith.constant dense<0.000000e+00> : vector<1x8xf32>
    %80 = vector.multi_reduction <add>, %79, %cst_40 [2] : vector<1x8x8xf32> to vector<1x8xf32>
    %81 = vector.shape_cast %80 : vector<1x8xf32> to vector<1x8x1xf32>
    %82 = tpu.reciprocal %81 {approx = true} : vector<1x8x1xf32> -> vector<1x8x1xf32>
    %83 = vector.broadcast %82 : vector<1x8x1xf32> to vector<1x8x8xf32>
    %84 = arith.mulf %79, %83 : vector<1x8x8xf32>
    %85 = arith.truncf %84 : vector<1x8x8xf32> to vector<1x8x8xbf16>
    %c0_41 = arith.constant 0 : index
    %c2 = arith.constant 2 : index
    %c0_42 = arith.constant 0 : index
    %c0_43 = arith.constant 0 : index
    %86 = vector.load %arg19[%c0_41, %c2, %c0_42, %c0_43] : memref<1x4x8x8xbf16, #tpu.memory_space<vmem>>, vector<1x1x8x8xbf16>
    %87 = vector.shape_cast %86 : vector<1x1x8x8xbf16> to vector<1x8x8xbf16>
    %88 = vector.shape_cast %85 : vector<1x8x8xbf16> to vector<1x1x8x8xbf16>
    tpu.vector_store %arg19[%c0_41, %c2, %c0_42, %c0_43], %88 {strides = array<i32>} : memref<1x4x8x8xbf16, #tpu.memory_space<vmem>>, vector<1x1x8x8xbf16>,
    %89 = arith.truncf %84 : vector<1x8x8xf32> to vector<1x8x8xbf16>
    "tpu.trace_start"() <{level = 10 : i32, message = "bqk,bkd->bqd"}> : () -> ()
    %cst_44 = arith.constant dense<0.000000e+00> : vector<1x8x8xf32>
    %90 = tpu.matmul %89, %73, %cst_44 {dimension_numbers = #tpu.dot_dimension_numbers<[2], [1], [1], [2], [0, 0, 0, 1, 1, 2], [0], [0]>} : vector<1x8x8xbf16>, vector<1x8x8xbf16>, vector<1x8x8xf32> -> vector<1x8x8xf32>
    "tpu.trace_stop"() : () -> ()
    %91 = arith.truncf %90 : vector<1x8x8xf32> to vector<1x8x8xbf16>
    %92 = vector.extract_strided_slice %24 {offsets = [0, 0, 24], sizes = [1, 8, 8], strides = [1, 1, 1]} : vector<1x8x32xbf16> to vector<1x8x8xbf16>
    %93 = vector.extract_strided_slice %26 {offsets = [0, 0, 24], sizes = [1, 8, 8], strides = [1, 1, 1]} : vector<1x8x32xbf16> to vector<1x8x8xbf16>
    %94 = vector.extract_strided_slice %28 {offsets = [0, 0, 24], sizes = [1, 8, 8], strides = [1, 1, 1]} : vector<1x8x32xbf16> to vector<1x8x8xbf16>
    "tpu.trace_start"() <{level = 10 : i32, message = "bqd,bkd->bqk"}> : () -> ()
    %cst_45 = arith.constant dense<0.000000e+00> : vector<1x8x8xf32>
    %95 = tpu.matmul %92, %93, %cst_45 {dimension_numbers = #tpu.dot_dimension_numbers<[2], [2], [1], [1], [0, 0, 0, 1, 1, 1], [0], [0]>} : vector<1x8x8xbf16>, vector<1x8x8xbf16>, vector<1x8x8xf32> -> vector<1x8x8xf32>
    "tpu.trace_stop"() : () -> ()
    %cst_46 = arith.constant dense<0xFF800000> : vector<1x8xf32>
    %96 = vector.multi_reduction <maximumf>, %95, %cst_46 [2] : vector<1x8x8xf32> to vector<1x8xf32>
    %97 = vector.shape_cast %96 : vector<1x8xf32> to vector<1x8x1xf32>
    %98 = vector.broadcast %97 : vector<1x8x1xf32> to vector<1x8x8xf32>
    %99 = arith.subf %95, %98 : vector<1x8x8xf32>
    %100 = math.exp %99 : vector<1x8x8xf32>
    %cst_47 = arith.constant dense<0.000000e+00> : vector<1x8xf32>
    %101 = vector.multi_reduction <add>, %100, %cst_47 [2] : vector<1x8x8xf32> to vector<1x8xf32>
    %102 = vector.shape_cast %101 : vector<1x8xf32> to vector<1x8x1xf32>
    %103 = tpu.reciprocal %102 {approx = true} : vector<1x8x1xf32> -> vector<1x8x1xf32>
    %104 = vector.broadcast %103 : vector<1x8x1xf32> to vector<1x8x8xf32>
    %105 = arith.mulf %100, %104 : vector<1x8x8xf32>
    %106 = arith.truncf %105 : vector<1x8x8xf32> to vector<1x8x8xbf16>
    %c0_48 = arith.constant 0 : index
    %c3 = arith.constant 3 : index
    %c0_49 = arith.constant 0 : index
    %c0_50 = arith.constant 0 : index
    %107 = vector.load %arg19[%c0_48, %c3, %c0_49, %c0_50] : memref<1x4x8x8xbf16, #tpu.memory_space<vmem>>, vector<1x1x8x8xbf16>
    %108 = vector.shape_cast %107 : vector<1x1x8x8xbf16> to vector<1x8x8xbf16>
    %109 = vector.shape_cast %106 : vector<1x8x8xbf16> to vector<1x1x8x8xbf16>
    tpu.vector_store %arg19[%c0_48, %c3, %c0_49, %c0_50], %109 {strides = array<i32>} : memref<1x4x8x8xbf16, #tpu.memory_space<vmem>>, vector<1x1x8x8xbf16>,
    %110 = arith.truncf %105 : vector<1x8x8xf32> to vector<1x8x8xbf16>
    "tpu.trace_start"() <{level = 10 : i32, message = "bqk,bkd->bqd"}> : () -> ()
    %cst_51 = arith.constant dense<0.000000e+00> : vector<1x8x8xf32>
    %111 = tpu.matmul %110, %94, %cst_51 {dimension_numbers = #tpu.dot_dimension_numbers<[2], [1], [1], [2], [0, 0, 0, 1, 1, 2], [0], [0]>} : vector<1x8x8xbf16>, vector<1x8x8xbf16>, vector<1x8x8xf32> -> vector<1x8x8xf32>
    "tpu.trace_stop"() : () -> ()
    %112 = arith.truncf %111 : vector<1x8x8xf32> to vector<1x8x8xbf16>
    %113 = tpu.concatenate %49, %70, %91, %112 in 2 : vector<1x8x8xbf16>, vector<1x8x8xbf16>, vector<1x8x8xbf16>, vector<1x8x8xbf16> -> vector<1x8x32xbf16>
    %114 = vector.shape_cast %113 : vector<1x8x32xbf16> to vector<8x32xbf16>
    %cst_52 = arith.constant dense<0.000000e+00> : vector<8x32xf32>
    %115 = tpu.matmul %114, %6, %cst_52 {dimension_numbers = #tpu.dot_dimension_numbers<[1], [0], [0], [1], [0, 0, 1, 1], [], []>} : vector<8x32xbf16>, vector<32x32xbf16>, vector<8x32xf32> -> vector<8x32xf32>
    %c0_53 = arith.constant 0 : index
    %c0_54 = arith.constant 0 : index
    %116 = vector.load %arg9[%c0_53, %c0_54] : memref<1x32xf32, #tpu.memory_space<vmem>>, vector<1x32xf32>
    %117 = vector.broadcast %116 : vector<1x32xf32> to vector<8x32xf32>
    %118 = arith.addf %115, %117 : vector<8x32xf32>
    %119 = arith.addf %118, %1 : vector<8x32xf32>
    %c0_55 = arith.constant 0 : index
    %c0_56 = arith.constant 0 : index
    %120 = vector.load %arg10[%c0_55, %c0_56] : memref<1x32xf32, #tpu.memory_space<vmem>>, vector<1x32xf32>
    %c0_57 = arith.constant 0 : index
    %c0_58 = arith.constant 0 : index
    %121 = vector.load %arg11[%c0_57, %c0_58] : memref<1x32xf32, #tpu.memory_space<vmem>>, vector<1x32xf32>
    %cst_59 = arith.constant dense<0.000000e+00> : vector<8xf32>
    %122 = vector.multi_reduction <add>, %119, %cst_59 [1] : vector<8x32xf32> to vector<8xf32>
    %123 = vector.shape_cast %122 : vector<8xf32> to vector<8x1xf32>
    %cst_60 = arith.constant 3.200000e+01 : f32
    %124 = vector.broadcast %cst_60 : f32 to vector<8x1xf32>
    %125 = arith.divf %123, %124 : vector<8x1xf32>
    %126 = vector.broadcast %125 : vector<8x1xf32> to vector<8x32xf32>
    %127 = arith.subf %119, %126 : vector<8x32xf32>
    %128 = arith.mulf %127, %127 : vector<8x32xf32>
    %cst_61 = arith.constant dense<0.000000e+00> : vector<8xf32>
    %129 = vector.multi_reduction <add>, %128, %cst_61 [1] : vector<8x32xf32> to vector<8xf32>
    %130 = vector.shape_cast %129 : vector<8xf32> to vector<8x1xf32>
    %cst_62 = arith.constant 3.200000e+01 : f32
    %131 = vector.broadcast %cst_62 : f32 to vector<8x1xf32>
    %132 = arith.divf %130, %131 : vector<8x1xf32>
    %cst_63 = arith.constant 9.99999974E-6 : f32
    %133 = vector.broadcast %cst_63 : f32 to vector<8x1xf32>
    %134 = arith.addf %132, %133 : vector<8x1xf32>
    %135 = math.rsqrt %134 : vector<8x1xf32>
    %136 = vector.broadcast %135 : vector<8x1xf32> to vector<8x32xf32>
    %137 = arith.mulf %127, %136 : vector<8x32xf32>
    %138 = vector.broadcast %120 : vector<1x32xf32> to vector<8x32xf32>
    %139 = arith.mulf %137, %138 : vector<8x32xf32>
    %140 = vector.broadcast %121 : vector<1x32xf32> to vector<8x32xf32>
    %141 = arith.addf %139, %140 : vector<8x32xf32>
    %142 = arith.truncf %141 : vector<8x32xf32> to vector<8x32xbf16>
    %cst_64 = arith.constant dense<0.000000e+00> : vector<8x64xf32>
    %143 = tpu.matmul %142, %7, %cst_64 {dimension_numbers = #tpu.dot_dimension_numbers<[1], [0], [0], [1], [0, 0, 1, 1], [], []>} : vector<8x32xbf16>, vector<32x64xbf16>, vector<8x64xf32> -> vector<8x64xf32>
    %c0_65 = arith.constant 0 : index
    %c0_66 = arith.constant 0 : index
    %144 = vector.load %arg13[%c0_65, %c0_66] : memref<1x64xf32, #tpu.memory_space<vmem>>, vector<1x64xf32>
    %145 = vector.broadcast %144 : vector<1x64xf32> to vector<8x64xf32>
    %146 = arith.addf %143, %145 : vector<8x64xf32>
    %cst_67 = arith.constant 5.000000e-01 : f32
    %147 = vector.broadcast %cst_67 : f32 to vector<8x64xf32>
    %148 = arith.mulf %147, %146 : vector<8x64xf32>
    %cst_68 = arith.constant 4.471500e-02 : f32
    %149 = vector.broadcast %cst_68 : f32 to vector<8x64xf32>
    %150 = arith.mulf %149, %146 : vector<8x64xf32>
    %151 = arith.mulf %150, %146 : vector<8x64xf32>
    %152 = arith.mulf %151, %146 : vector<8x64xf32>
    %153 = arith.addf %146, %152 : vector<8x64xf32>
    %cst_69 = arith.constant 0.797884583 : f32
    %154 = vector.broadcast %cst_69 : f32 to vector<8x64xf32>
    %155 = arith.mulf %154, %153 : vector<8x64xf32>
    %156 = math.tanh %155 : vector<8x64xf32>
    %cst_70 = arith.constant 1.000000e+00 : f32
    %157 = vector.broadcast %cst_70 : f32 to vector<8x64xf32>
    %158 = arith.addf %157, %156 : vector<8x64xf32>
    %159 = arith.mulf %148, %158 : vector<8x64xf32>
    %160 = arith.truncf %159 : vector<8x64xf32> to vector<8x64xbf16>
    %cst_71 = arith.constant dense<0.000000e+00> : vector<8x32xf32>
    %161 = tpu.matmul %160, %8, %cst_71 {dimension_numbers = #tpu.dot_dimension_numbers<[1], [0], [0], [1], [0, 0, 1, 1], [], []>} : vector<8x64xbf16>, vector<64x32xbf16>, vector<8x32xf32> -> vector<8x32xf32>
    %c0_72 = arith.constant 0 : index
    %c0_73 = arith.constant 0 : index
    %162 = vector.load %arg15[%c0_72, %c0_73] : memref<1x32xf32, #tpu.memory_space<vmem>>, vector<1x32xf32>
    %163 = vector.broadcast %162 : vector<1x32xf32> to vector<8x32xf32>
    %164 = arith.addf %161, %163 : vector<8x32xf32>
    %165 = arith.addf %164, %141 : vector<8x32xf32>
    %c0_74 = arith.constant 0 : index
    %c0_75 = arith.constant 0 : index
    %166 = vector.load %arg16[%c0_74, %c0_75] : memref<1x32xf32, #tpu.memory_space<vmem>>, vector<1x32xf32>
    %c0_76 = arith.constant 0 : index
    %c0_77 = arith.constant 0 : index
    %167 = vector.load %arg17[%c0_76, %c0_77] : memref<1x32xf32, #tpu.memory_space<vmem>>, vector<1x32xf32>
    %cst_78 = arith.constant dense<0.000000e+00> : vector<8xf32>
    %168 = vector.multi_reduction <add>, %165, %cst_78 [1] : vector<8x32xf32> to vector<8xf32>
    %169 = vector.shape_cast %168 : vector<8xf32> to vector<8x1xf32>
    %cst_79 = arith.constant 3.200000e+01 : f32
    %170 = vector.broadcast %cst_79 : f32 to vector<8x1xf32>
    %171 = arith.divf %169, %170 : vector<8x1xf32>
    %172 = vector.broadcast %171 : vector<8x1xf32> to vector<8x32xf32>
    %173 = arith.subf %165, %172 : vector<8x32xf32>
    %174 = arith.mulf %173, %173 : vector<8x32xf32>
    %cst_80 = arith.constant dense<0.000000e+00> : vector<8xf32>
    %175 = vector.multi_reduction <add>, %174, %cst_80 [1] : vector<8x32xf32> to vector<8xf32>
    %176 = vector.shape_cast %175 : vector<8xf32> to vector<8x1xf32>
    %cst_81 = arith.constant 3.200000e+01 : f32
    %177 = vector.broadcast %cst_81 : f32 to vector<8x1xf32>
    %178 = arith.divf %176, %177 : vector<8x1xf32>
    %cst_82 = arith.constant 9.99999974E-6 : f32
    %179 = vector.broadcast %cst_82 : f32 to vector<8x1xf32>
    %180 = arith.addf %178, %179 : vector<8x1xf32>
    %181 = math.rsqrt %180 : vector<8x1xf32>
    %182 = vector.broadcast %181 : vector<8x1xf32> to vector<8x32xf32>
    %183 = arith.mulf %173, %182 : vector<8x32xf32>
    %184 = vector.broadcast %166 : vector<1x32xf32> to vector<8x32xf32>
    %185 = arith.mulf %183, %184 : vector<8x32xf32>
    %186 = vector.broadcast %167 : vector<1x32xf32> to vector<8x32xf32>
    %187 = arith.addf %185, %186 : vector<8x32xf32>
    %188 = vector.shape_cast %187 : vector<8x32xf32> to vector<1x8x32xf32>
    %c0_83 = arith.constant 0 : index
    %c0_84 = arith.constant 0 : index
    %c0_85 = arith.constant 0 : index
    %189 = vector.load %arg18[%c0_83, %c0_84, %c0_85] : memref<1x8x32xf32, #tpu.memory_space<vmem>>, vector<1x8x32xf32>
    tpu.vector_store %arg18[%c0_83, %c0_84, %c0_85], %188 {strides = array<i32>} : memref<1x8x32xf32, #tpu.memory_space<vmem>>, vector<1x8x32xf32>,
    return
  }
  func.func @transform_0(%arg0: i32) -> (i32, i32, i32) {
    %c0_i32 = arith.constant 0 : i32
    %c0_i32_0 = arith.constant 0 : i32
    %c0_i32_1 = arith.constant 0 : i32
    return %arg0, %c0_i32, %c0_i32_0 : i32, i32, i32
  }
  func.func @transform_1(%arg0: i32) -> (i32, i32) {
    %c0_i32 = arith.constant 0 : i32
    %c0_i32_0 = arith.constant 0 : i32
    %c0_i32_1 = arith.constant 0 : i32
    return %c0_i32, %c0_i32_0 : i32, i32
  }
  func.func @transform_2(%arg0: i32) -> (i32, i32) {
    %c0_i32 = arith.constant 0 : i32
    %c0_i32_0 = arith.constant 0 : i32
    %c0_i32_1 = arith.constant 0 : i32
    return %c0_i32, %c0_i32_0 : i32, i32
  }
  func.func @transform_3(%arg0: i32) -> (i32, i32) {
    %c0_i32 = arith.constant 0 : i32
    %c0_i32_0 = arith.constant 0 : i32
    %c0_i32_1 = arith.constant 0 : i32
    return %c0_i32, %c0_i32_0 : i32, i32
  }
  func.func @transform_4(%arg0: i32) -> (i32, i32) {
    %c0_i32 = arith.constant 0 : i32
    %c0_i32_0 = arith.constant 0 : i32
    %c0_i32_1 = arith.constant 0 : i32
    return %c0_i32, %c0_i32_0 : i32, i32
  }
  func.func @transform_5(%arg0: i32) -> (i32, i32) {
    %c0_i32 = arith.constant 0 : i32
    %c0_i32_0 = arith.constant 0 : i32
    %c0_i32_1 = arith.constant 0 : i32
    return %c0_i32, %c0_i32_0 : i32, i32
  }
  func.func @transform_6(%arg0: i32) -> (i32, i32) {
    %c0_i32 = arith.constant 0 : i32
    %c0_i32_0 = arith.constant 0 : i32
    %c0_i32_1 = arith.constant 0 : i32
    return %c0_i32, %c0_i32_0 : i32, i32
  }
  func.func @transform_7(%arg0: i32) -> (i32, i32) {
    %c0_i32 = arith.constant 0 : i32
    %c0_i32_0 = arith.constant 0 : i32
    %c0_i32_1 = arith.constant 0 : i32
    return %c0_i32, %c0_i32_0 : i32, i32
  }
  func.func @transform_8(%arg0: i32) -> (i32, i32) {
    %c0_i32 = arith.constant 0 : i32
    %c0_i32_0 = arith.constant 0 : i32
    %c0_i32_1 = arith.constant 0 : i32
    return %c0_i32, %c0_i32_0 : i32, i32
  }
  func.func @transform_9(%arg0: i32) -> (i32, i32) {
    %c0_i32 = arith.constant 0 : i32
    %c0_i32_0 = arith.constant 0 : i32
    %c0_i32_1 = arith.constant 0 : i32
    return %c0_i32, %c0_i32_0 : i32, i32
  }
  func.func @transform_10(%arg0: i32) -> (i32, i32) {
    %c0_i32 = arith.constant 0 : i32
    %c0_i32_0 = arith.constant 0 : i32
    %c0_i32_1 = arith.constant 0 : i32
    return %c0_i32, %c0_i32_0 : i32, i32
  }
  func.func @transform_11(%arg0: i32) -> (i32, i32) {
    %c0_i32 = arith.constant 0 : i32
    %c0_i32_0 = arith.constant 0 : i32
    %c0_i32_1 = arith.constant 0 : i32
    return %c0_i32, %c0_i32_0 : i32, i32
  }
  func.func @transform_12(%arg0: i32) -> (i32, i32) {
    %c0_i32 = arith.constant 0 : i32
    %c0_i32_0 = arith.constant 0 : i32
    %c0_i32_1 = arith.constant 0 : i32
    return %c0_i32, %c0_i32_0 : i32, i32
  }
  func.func @transform_13(%arg0: i32) -> (i32, i32) {
    %c0_i32 = arith.constant 0 : i32
    %c0_i32_0 = arith.constant 0 : i32
    %c0_i32_1 = arith.constant 0 : i32
    return %c0_i32, %c0_i32_0 : i32, i32
  }
  func.func @transform_14(%arg0: i32) -> (i32, i32) {
    %c0_i32 = arith.constant 0 : i32
    %c0_i32_0 = arith.constant 0 : i32
    %c0_i32_1 = arith.constant 0 : i32
    return %c0_i32, %c0_i32_0 : i32, i32
  }
  func.func @transform_15(%arg0: i32) -> (i32, i32) {
    %c0_i32 = arith.constant 0 : i32
    %c0_i32_0 = arith.constant 0 : i32
    %c0_i32_1 = arith.constant 0 : i32
    return %c0_i32, %c0_i32_0 : i32, i32
  }
  func.func @transform_16(%arg0: i32) -> (i32, i32) {
    %c0_i32 = arith.constant 0 : i32
    %c0_i32_0 = arith.constant 0 : i32
    %c0_i32_1 = arith.constant 0 : i32
    return %c0_i32, %c0_i32_0 : i32, i32
  }
  func.func @transform_17(%arg0: i32) -> (i32, i32, i32) {
    %c0_i32 = arith.constant 0 : i32
    %c0_i32_0 = arith.constant 0 : i32
    %c0_i32_1 = arith.constant 0 : i32
    return %arg0, %c0_i32, %c0_i32_0 : i32, i32, i32
  }
  func.func @transform_18(%arg0: i32) -> (i32, i32, i32, i32) {
    %c0_i32 = arith.constant 0 : i32
    %c0_i32_0 = arith.constant 0 : i32
    %c0_i32_1 = arith.constant 0 : i32
    %c0_i32_2 = arith.constant 0 : i32
    return %arg0, %c0_i32, %c0_i32_0, %c0_i32_1 : i32, i32, i32, i32
  }
}

</mosaic_0001>

<bundles_post_ra>
// kernel: tpu_custom_call.1
= control target key start
LH: loop header
LB: loop body
LE: loop exit
PB: predicated region body
PF: predicated region fallthrough
CT: control target
= control target key end

     0   :  { %s2171_s0 = inlined_call_operand.vmem [shape: f32[2,8,32], index: 0, kind: input, shape index: {}]   ;;  %s2172_s1 = inlined_call_operand.vmem [shape: bf16[32,32], index: 1, kind: input, shape index: {}]   ;;  %s2173_s2 = inlined_call_operand.vmem [shape: f32[1,32], index: 2, kind: input, shape index: {}]   ;;  %s2174_s3 = inlined_call_operand.vmem [shape: bf16[32,32], index: 3, kind: input, shape index: {}]   ;;  %s2175_s4 = inlined_call_operand.vmem [shape: f32[1,32], index: 4, kind: input, shape index: {}]   ;;  %s2176_s5 = inlined_call_operand.hbm [shape: bf16[32,32], index: 5, kind: input, shape index: {}]   ;;  %s2177_s6 = inlined_call_operand.vmem [shape: f32[1,32], index: 6, kind: input, shape index: {}]   ;;  %s2178_s7 = inlined_call_operand.hbm [shape: bf16[32,32], index: 7, kind: input, shape index: {}]   ;;  %s2179_s8 = inlined_call_operand.vmem [shape: f32[1,32], index: 8, kind: input, shape index: {}]   ;;  %s2180_s9 = inlined_call_operand.vmem [shape: f32[1,32], index: 9, kind: input, shape index: {}]   ;;  %s2181_s10 = inlined_call_operand.vmem [shape: f32[1,32], index: 10, kind: input, shape index: {}]   ;;  %s2182_s11 = inlined_call_operand.hbm [shape: bf16[32,64], index: 11, kind: input, shape index: {}]   ;;  %s2183_s12 = inlined_call_operand.vmem [shape: f32[1,64], index: 12, kind: input, shape index: {}]   ;;  %s2184_s13 = inlined_call_operand.vmem [shape: bf16[64,32], index: 13, kind: input, shape index: {}]   ;;  %s2185_s14 = inlined_call_operand.vmem [shape: f32[1,32], index: 14, kind: input, shape index: {}]   ;;  %s2186_s15 = inlined_call_operand.vmem [shape: f32[1,32], index: 15, kind: input, shape index: {}]   ;;  %s2187_s16 = inlined_call_operand.vmem [shape: f32[1,32], index: 16, kind: input, shape index: {}]   ;;  %s2188_s17 = inlined_call_operand.hbm [shape: f32[2,8,32], index: 17, kind: output, shape index: {0}]   ;;  %s2189_s18 = inlined_call_operand.hbm [shape: bf16[2,4,8,8], index: 18, kind: output, shape index: {1}]  }
   0x1   :  { %2197 = sst [smem:[#allocation21_spill]] %s2171_s0 }
   0x2   :  { %2198 = sst [smem:[#allocation22_spill]] %s2172_s1 }
   0x3   :  { %2199 = sst [smem:[#allocation23_spill]] %s2173_s2 }
   0x4   :  { %2200 = sst [smem:[#allocation24_spill]] %s2174_s3 }
   0x5   :  { %2201 = sst [smem:[#allocation25_spill]] %s2176_s5 }
   0x6   :  { %2202 = sst [smem:[#allocation26_spill]] %s2178_s7 }
   0x7   :  { %2203 = sst [smem:[#allocation27_spill]] %s2187_s16 }
   0x8   :  { %24 = vsyncpa [#allocation3], 0 }
   0x9   :  { %25 = vsyncpa [#allocation6], 0 }
   0xa   :  { %26 = vsyncpa [#allocation4], 0 }
   0xb   :  { %28 = vsyncpa [#allocation4 + $0x1], 0 }
   0xc   :  { %29 = vsyncpa [#allocation10], 0 }
   0xd   :  { %31 = vsyncpa [#allocation10 + $0x1], 0  ;;  %s1908_s27 = smov 0   ;;  %s1910_s28 = smov 0  }
   0xe   :  { %s1912_s29 = smov 0   ;;  %s1914_s30 = smov 0  }
   0xf LB: > { %2204 = sst [smem:[#allocation15_spill]] %s1785_s27  ;;  %s1929_s0 = sadd.s32 4294967295, %s1797_s30   ;;  %s1797_s30 = sphi %s1914_s30, %s2224_s30   ;;  %s1793_s29 = sphi %s1912_s29, %s2226_s29   ;;  %s1789_s28 = sphi %s1910_s28, %s2228_s28   ;;  %s1785_s27 = sphi %s1908_s27, %s2227_s27  }
  0x10   : > { %2205 = sst [smem:[#allocation16_spill]] %s1793_s29  ;;  %s1377_s19 = sadd.s32 4294967294, %s1797_s30  }
  0x11   : > { %2206 = sst [smem:[#allocation17_spill]] %s1797_s30  ;;  %s1933_s1 = sadd.s32 1, %s1797_s30  }
  0x12   : > { %2207 = sst [smem:[#allocation18_spill]] %s1933_s1  ;;  %s406_s20 = sadd.s32 1, %s1793_s29 }
  0x13   : > { %s403_s21 = ssub.s32 %s1797_s30, %s1933_s1  ;;  %p416_p0 = scmp.ne.s32.totalorder %s1793_s29, %s1789_s28 }
  0x14   : > { %p404_p1 = scmp.eq.s32.totalorder %s403_s21, 0  ;;  %p417_p2 = scmp.eq.s32.totalorder %s1929_s0, 1 }
  0x15   : > { %p422_p3 = scmp.ne.s32.totalorder %s1789_s28, %s1785_s27  ;;  %p423_p4 = scmp.eq.s32.totalorder %s1377_s19, 1 }
  0x16   : > { %s1944_s22 = scalar_select %p404_p1, %s1793_s29, %s406_s20  }
  0x17   : > { %p1946_p5 = por %p417_p2, %p416_p0  ;;  %p1950_p6 = por %p423_p4, %p422_p3 }
  0x18   : > { %2208 = sst [smem:[#allocation19_spill]] %s1944_s22  ;;  %p1378_p7 = scmp.ge.s32.totalorder %s1797_s30, 1 }
  0x19   : > { %s2210_s23 = scalar_select %p1950_p6, 1, 0 }
  0x1a   : > { %p456_p8 = scmp.lt.s32.totalorder %s1797_s30, 3  ;;  %p1518_p9 = scmp.eq.s32.totalorder %s1929_s0, 0 }
  0x1b   : > { %2211 = sst [smem:[#allocation20_spill]] %s2210_s23  ;;  %s1799_s1 = smov [#allocation5]  }
  0x1c   : > { %p1957_p10 = pnand %p1378_p7, %p456_p8  ;;  %s2213_s7 = sld [smem:[#allocation26_spill]] }
  0x1d   : > { %s2214_s5 = sld [smem:[#allocation25_spill]]  ;;  %s498_s23 = sshll.u32 %s1799_s1, 4  ;;  %s499_s23 = int_to_ptr.vmem [resolvable:$true] %s498_s23 }
  0x1e   : > { %p1501_p11 = pneg %p1957_p10  ;;  %s1800_s25 = smov 64  }
  0x1f   : > { %s1801_s26 = smov 4   ;;  %s1803_s30 = smov [#allocation7]  }
  0x20   : > { %p1971_p12 = pnand %p1518_p9, %p1501_p11  ;;  %s521_s16 = sshll.u32 %s1803_s30, 4  ;;  %s522_s16 = int_to_ptr.vmem [resolvable:$true] %s521_s16 }
  0x22   : > { %s496_s19 = sshll.u32 %s2213_s7, 4  ;;  %s1802_s7 = smov [#allocation2]   ;;  %s497_s19 = int_to_ptr.hbm [resolvable:$true] %s496_s19 }
  0x23   : > { %s479_s22 = sshll.u32 %s2214_s5, 4  ;;  %s481_s27 = sshll.u32 %s1802_s7, 4  ;;  %s480_s22 = int_to_ptr.hbm [resolvable:$true] %s479_s22  ;;  %s482_s27 = int_to_ptr.vmem [resolvable:$true] %s481_s27 }
  0x24   : > { %1507 = dma.hbm_to_vmem [thread:$0]  (!%p1971_p12), %s497_s19, 256, %s499_s23, [#allocation6], %s1800_s25, %s1800_s25, %s1801_s26  }
  0x25   : > { %s519_s5 = sshll.u32 %s2182_s11, 4  ;;  %559 = sbr.rel (%p1957_p10) target bundleno = 1949 (0x79d), region = 88  ;;  %s520_s5 = int_to_ptr.hbm [resolvable:$true] %s519_s5 }
  0x26   : > { %1504 = dma.hbm_to_vmem [thread:$0]  (!%p1971_p12), %s480_s22, 256, %s482_s27, [#allocation3], %s1800_s25, %s1800_s25, %s1801_s26  }
  0x27   : > { %1510 = dma.hbm_to_vmem [thread:$0]  (!%p1971_p12), %s520_s5, 256, %s522_s16, [#allocation6], %s1800_s25, %s1800_s25, %s1801_s26  }
  0x2a   : > { %1768 = dma.done.wait (%p1518_p9), [#allocation3], 256  }
  0x2b   : > { %1770 = vsyncadd (%p1518_p9), [#allocation3], 4294967040 }
  0x2c   : > { %1772 = dma.done.wait (%p1518_p9), [#allocation6], 512  }
  0x2d   : > { %1774 = vsyncadd (%p1518_p9), [#allocation6], 4294966784  ;;  %p628_p13 = scmp.lt.s32.totalorder %s1929_s0, 1  ;;  %s2216_s29 = sld [smem:[#allocation21_spill]]  ;;  %vm679_vm0 = vcmask 261120   ;;  %vm758_vm1 = vcmask 64512  }
  0x2e   : > { %s2217_s23 = sld [smem:[#allocation22_spill]]  ;;  %v1572_v7 = vld [vmem:[%s2175_s4] ss:$0 sm:$0xff]  ;;  %s1805_s1 = smov 120   ;;  %v1475_v22 = vld [vmem:[#allocation2 + $0x8] sm:$0xff]  ;;  %vm795_vm2 = vcmask 1043456  }
  0x2f   : > { %s629_s7 = scalar_select %p628_p13, %s1929_s0, 1  ;;  %747 = vmatpush.bf16.msra.mxu2 %v1475_v22  ;;  %v1474_v35 = vld [vmem:[#allocation2] sm:$0xff]  ;;  %vm790_vm3 = vcmask 60416   ;;  %vm1017_vm4 = vcmask 130048   ;;  %vm1020_vm5 = vcmask 195584   ;;  %vm1165_vm10 = vcmask 523264  }
  0x30   : > { %s2218_s3 = sld [smem:[#allocation24_spill]]  ;;  %s1806_s22 = smov 104   ;;  %v1573_v50 = vld [vmem:[%s2177_s6] ss:$0 sm:$0xff] }
  0x31   : > { %s1389_s5 = sshll.u32 %s629_s7, 3  ;;  %s2219_s16 = sld [smem:[#allocation23_spill]] }
  0x32   : > { %s2050_s25 = sand.u32 1, %s1789_s28   ;;  %s1807_s21 = smov 8  }
  0x33   : > { %s631_s30 = scalar_lea.vmem %s2216_s29, %s1389_s5  ;;  %748 = vmatpush.bf16.msra.mxu2 %v1474_v35  ;;  %s1388_s26 = sshll.u32 %s2050_s25, 4 }
  0x34   : > { %v1471_v0 = vld [vmem:[%s2217_s23 + $0x8] sm:$0xff]  ;;  %v1470_v2 = vld [vmem:[%s2217_s23] sm:$0xff]  ;;  %s2054_s20 = scalar_lea.vmem [#allocation9], %s1388_s26  ;;  %s1808_s7 = smov 24  }
  0x35   : > { %689 = vmatpush.bf16.msra.mxu0 %v1471_v0  ;;  %v2011_v4 = vld [vmem:[%s631_s30] sm:$0xff]  ;;  %s1804_s30 = smov 112   ;;  %s1809_s5 = smov 16  }
  0x36   : > { %v1473_v1 = vld [vmem:[%s2218_s3 + $0x8] sm:$0xff]  ;;  %v1472_v3 = vld [vmem:[%s2218_s3] sm:$0xff]  ;;  %v634_v5 = vpack.c.bf16 %v2011_v4, %v2011_v4  ;;  %s1484_s24 = sshll.u32 %s1929_s0, 4  ;;  %s1248_s19 = sshll.u32 %s2054_s20, 4  ;;  %s1249_s19 = int_to_ptr.vmem [resolvable:$true] %s1248_s19 }
  0x37   : > { %718 = vmatpush.bf16.msra.mxu1 %v1473_v1  ;;  %v1571_v6 = vld [vmem:[%s2219_s16] ss:$0 sm:$0xff]  ;;  %s1222_s16 = scalar_lea.sflag [#allocation10], %s2050_s25 }
  0x38   : > { %1416 = vmatmul.msk.bf16.vlgmr.msra.gmra.mxu2 %vm679_vm0, %v634_v5 }
  0x39   : > { %690 = vmatpush.bf16.msra.mxu0 %v1470_v2 }
  0x3b   : > { %719 = vmatpush.bf16.msra.mxu1 %v1472_v3 }
  0x3c   : > { %1398 = vmatmul.msk.bf16.vlgmr.msra.gmra.mxu0 %vm679_vm0, %v634_v5 }
  0x3e   : > { %1407 = vmatmul.msk.bf16.vlgmr.msra.gmra.mxu1 %vm679_vm0, %v634_v5 }
  0xb9   : > { %v692_v8 = vpop.f32.mrf.mxu0 }
  0xba   : > { %v693_v10 = vadd.f32 %v1571_v6, %v692_v8 }
  0xbb   : > { %v721_v9 = vpop.f32.mrf.mxu1  ;;  %v750_v51 = vpop.f32.mrf.mxu2 }
  0xbc   : > { %v722_v11 = vadd.f32 %v1572_v7, %v721_v9  ;;  %v754_v12 = vmul.f32 0.35355338, %v693_v10  ;;  %v751_v52 = vadd.f32 %v1573_v50, %v750_v51  ;;  %v1476_v50 = vld [vmem:[#allocation5] sm:$0xff] }
  0xbe   : > { %v756_v13 = vpack.c.bf16 %v722_v11, %v722_v11  ;;  %v755_v14 = vpack.c.bf16 %v754_v12, %v754_v12  ;;  %v757_v53 = vpack.c.bf16 %v751_v52, %v751_v52 }
  0xc0   : > { %v819_v15 = vunpack.c.l.b16 %v756_v13  ;;  %v763_v16 = vsel %vm758_vm1, %v756_v13, 0  ;;  %v814_v17 = vunpack.c.l.b16 %v755_v14  ;;  %v857_v54 = vunpack.c.l.b16 %v757_v53 }
  0xc1   : > { %772 = vmatpush.bf16.xpose.msra.mxu3 %v763_v16  ;;  %v694_v19 = vpop.f32.mrf.mxu0  ;;  %v797_v55 = vsel %vm795_vm2, %v757_v53, 0 }
  0xc2   : > { %v820_v18 = vpack.c.b16 %v819_v15, %v819_v15  ;;  %v815_v21 = vpack.c.b16 %v814_v17, %v814_v17  ;;  %806 = vmatpush.bf16.msrb.mxu0 %v797_v55  ;;  %v858_v56 = vpack.c.b16 %v857_v54, %v857_v54 }
  0xc3   : > { %v723_v20 = vpop.f32.mrf.mxu1  ;;  %v752_v57 = vpop.f32.mrf.mxu2 }
  0xc4   : > { %883 = vrot.lane.b32.xlu1 %v820_v18, %s1804_s30  ;;  %821 = vrot.lane.b32.xlu0 %v820_v18, %s1805_s1 }
  0xc5   : > { %881 = vrot.lane.b32.xlu2 %v815_v21, %s1804_s30 }
  0xc8   : > { %1417 = vmatmul.msk.bf16.vlgmr.msra.gmra.mxu3 %vm758_vm1, %v755_v14 }
  0xcc   : > { %942 = vrot.lane.b32.xlu1 %v820_v18, %s1806_s22  ;;  %816 = vrot.lane.b32.xlu0 %v815_v21, %s1805_s1 }
  0xcd   : > { %940 = vrot.lane.b32.xlu2 %v815_v21, %s1806_s22 }
 0x11f   : > { %v882_v27 = vpop.permute.xlu2 %881 }
 0x127   : > { %v941_v33 = vpop.permute.xlu2 %940 }
 0x136   : > { %v884_v23 = vpop.permute.xlu1 %883  ;;  %v822_v24 = vpop.permute.xlu0 %821 }
 0x137   : > { %v827_v25 = vsel %vm758_vm1, %v822_v24, 0  ;;  %v889_v26 = vsel %vm758_vm1, %v884_v23, 0 }
 0x138   : > { %836 = vmatpush.bf16.xpose.msrb.mxu1 %v827_v25  ;;  %898 = vmatpush.bf16.xpose.msrb.mxu3 %v889_v26 }
 0x13e   : > { %v943_v28 = vpop.permute.xlu1 %942  ;;  %v817_v29 = vpop.permute.xlu0 %816 }
 0x13f   : > { %v948_v30 = vsel %vm758_vm1, %v943_v28, 0  ;;  %1419 = vmatmul.msk.bf16.vlgmr.msrb.gmra.mxu1 %vm758_vm1, %v817_v29  ;;  %1422 = vmatmul.msk.bf16.vlgmr.msrb.gmra.mxu3 %vm758_vm1, %v882_v27 }
 0x140   : > { %957 = vmatpush.bf16.xpose.msra.mxu1 %v948_v30 }
 0x14b   : > { %v774_v31 = vpop.f32.mrf.mxu3 }
 0x14c   : > { %v778_v32 = vsel %vm758_vm1, %v774_v31, -inf }
 0x14d   : > { %779 = vmax.xlane.f32.xlu1 %v778_v32 }
 0x14f   : > { %1425 = vmatmul.msk.bf16.vlgmr.msra.gmra.mxu1 %vm758_vm1, %v941_v33 }
 0x153   : > { %v776_v34 = vpop.f32.mrf.mxu3 }
 0x1bc   : > { %v838_v36 = vpop.f32.mrf.mxu1 }
 0x1bd   : > { %v842_v37 = vsel %vm758_vm1, %v838_v36, -inf }
 0x1be   : > { %843 = vmax.xlane.f32.xlu0 %v842_v37 }
 0x1c0   : > { %v780_v38 = vpop.xlane.xlu1 %779 }
 0x1c1   : > { %v781_v39 = vsub.f32 %v774_v31, %v780_v38 }
 0x1c2   : > { %v900_v40 = vpop.f32.mrf.mxu3 }
 0x1c3   : > { %v782_v41 = vmul.f32 1.442695, %v781_v39  ;;  %v904_v49 = vsel %vm758_vm1, %v900_v40, -inf }
 0x1c4   : > { %v840_v42 = vpop.f32.mrf.mxu1 }
 0x1c5   : > { %1581 = vpow2.f32 %v782_v41 }
 0x1ca   : > { %v902_v43 = vpop.f32.mrf.mxu3 }
 0x1cb   : > { %v1582_v44 = vpop.eup %1581 }
 0x1cc   : > { %v959_v45 = vpop.f32.mrf.mxu1  ;;  %v784_v46 = vsel %vm758_vm1, %v1582_v44, 0.0 }
 0x1cd   : > { %785 = vadd.xlane.f32.xlu1 %v784_v46  ;;  %v963_v47 = vsel %vm758_vm1, %v959_v45, -inf }
 0x1ce   : > { %964 = vmax.xlane.f32.xlu2 %v963_v47 }
 0x1d4   : > { %v961_v48 = vpop.f32.mrf.mxu1 }
 0x1d6   : > { %905 = vmax.xlane.f32.xlu2 %v904_v49  ;;  %v1477_v49 = vld [vmem:[#allocation5 + $0x8] sm:$0xff] }
 0x1d7   : > { %1047 = vmatpush.bf16.msra.mxu3 %v1477_v49 }
 0x1db   : > { %1048 = vmatpush.bf16.msra.mxu3 %v1476_v50 }
 0x1ee   : > { %859 = vrot.lane.b32.xlu2 %v858_v56, %s1805_s1 }
 0x231   : > { %v844_v58 = vpop.xlane.xlu0 %843 }
 0x232   : > { %v845_v59 = vsub.f32 %v838_v36, %v844_v58  ;;  %v1574_v58 = vld [vmem:[%s2179_s8] ss:$0 sm:$0xff] }
 0x234   : > { %v846_v60 = vmul.f32 1.442695, %v845_v59 }
 0x236   : > { %1583 = vpow2.f32 %v846_v60 }
 0x23c   : > { %v1584_v61 = vpop.eup %1583 }
 0x23d   : > { %v848_v62 = vsel %vm758_vm1, %v1584_v61, 0.0 }
 0x23e   : > { %849 = vadd.xlane.f32.xlu0 %v848_v62 }
 0x240   : > { %v786_v63 = vpop.xlane.xlu1 %785 }
 0x241   : > { %1585 = vrcp.f32 %v786_v63  ;;  %v965_v0 = vpop.xlane.xlu2 %964 }
 0x242   : > { %v966_v1 = vsub.f32 %v959_v45, %v965_v0  ;;  %v1810_v0 = vmov 32.0  }
 0x244   : > { %v967_v2 = vmul.f32 1.442695, %v966_v1 }
 0x246   : > { %1587 = vpow2.f32 %v967_v2 }
 0x247   : > { %v1586_v3 = vpop.eup %1585 }
 0x248   : > { %v788_v5 = vmul.f32 %v1586_v3, %v1582_v44 }
 0x249   : > { %v906_v6 = vpop.xlane.xlu2 %905 }
 0x24a   : > { %v907_v7 = vsub.f32 %v900_v40, %v906_v6  ;;  %v789_v8 = vpack.c.bf16 %v788_v5, %v788_v5 }
 0x24c   : > { %v1588_v9 = vpop.eup %1587  ;;  %v908_v10 = vmul.f32 1.442695, %v907_v7  ;;  %1418 = vmatmul.msk.bf16.vlgmr.msrb.gmra.mxu0 %vm758_vm1, %v789_v8  ;;  %791 = vst.msk [vmem:[%s2054_s20] sm:$0xf] %vm790_vm3, %v789_v8 }
 0x24d   : > { %v969_v11 = vsel %vm758_vm1, %v1588_v9, 0.0 }
 0x24e   : > { %1589 = vpow2.f32 %v908_v10  ;;  %970 = vadd.xlane.f32.xlu0 %v969_v11 }
 0x251   : > { %v860_v14 = vpop.permute.xlu2 %859 }
 0x252   : > { %v865_v15 = vsel %vm795_vm2, %v860_v14, 0 }
 0x253   : > { %874 = vmatpush.bf16.msrb.mxu2 %v865_v15 }
 0x254   : > { %v1590_v12 = vpop.eup %1589 }
 0x255   : > { %v910_v13 = vsel %vm758_vm1, %v1590_v12, 0.0 }
 0x256   : > { %911 = vadd.xlane.f32.xlu1 %v910_v13  ;;  %v1478_v13 = vld [vmem:[#allocation7] sm:$0xff] }
 0x262   : > { %977 = vrot.lane.b32.xlu0 %v858_v56, %s1806_s22  ;;  %s1715_s22 = scalar_lea.hbm %s2189_s18, 32 }
 0x26f   : > { %918 = vrot.lane.b32.xlu1 %v858_v56, %s1804_s30 }
 0x2b1   : > { %v850_v16 = vpop.xlane.xlu0 %849 }
 0x2b2   : > { %1591 = vrcp.f32 %v850_v16 }
 0x2b8   : > { %v1592_v17 = vpop.eup %1591 }
 0x2b9   : > { %v852_v18 = vmul.f32 %v1592_v17, %v1584_v61 }
 0x2bb   : > { %v853_v19 = vpack.c.bf16 %v852_v18, %v852_v18 }
 0x2bd   : > { %1421 = vmatmul.msk.bf16.vlgmr.msrb.gmra.mxu2 %vm758_vm1, %v853_v19  ;;  %1420 = vst.msk [vmem:[%s2054_s20 + $0x4] sm:$0xf] %vm790_vm3, %v853_v19 }
 0x2c1   : > { %v971_v20 = vpop.xlane.xlu0 %970 }
 0x2c2   : > { %1593 = vrcp.f32 %v971_v20 }
 0x2c8   : > { %v1594_v21 = vpop.eup %1593 }
 0x2c9   : > { %v973_v22 = vmul.f32 %v1594_v21, %v1588_v9  ;;  %v808_v23 = vpop.f32.mrf.mxu0  ;;  %v912_v24 = vpop.xlane.xlu1 %911 }
 0x2ca   : > { %1595 = vrcp.f32 %v912_v24  ;;  %v812_v52 = vpack.c.bf16 %v808_v23, %v808_v23  ;;  %v1575_v23 = vld [vmem:[%s2180_s9] ss:$0 sm:$0xff] }
 0x2cb   : > { %v974_v25 = vpack.c.bf16 %v973_v22, %v973_v22  ;;  %1597 = vrcp.f32 %v1810_v0 }
 0x2cd   : > { %1426 = vst.msk [vmem:[%s2054_s20 + $0xc] sm:$0xf] %vm790_vm3, %v974_v25 }
 0x2d0   : > { %v1596_v26 = vpop.eup %1595 }
 0x2d1   : > { %v914_v27 = vmul.f32 %v1596_v26, %v1590_v12  ;;  %v810_v28 = vpop.f32.mrf.mxu0  ;;  %v1598_v1 = vpop.eup %1597  ;;  %v1479_v12 = vld [vmem:[#allocation7 + $0x8] sm:$0xff] }
 0x2d2   : > { %v1061_v2 = vmul.f32 32.0, %v1598_v1  ;;  %vm1065_vm6 = vweird.f32 %v1598_v1 }
 0x2d3   : > { %v915_v29 = vpack.c.bf16 %v914_v27, %v914_v27 }
 0x2d4   : > { %v978_v30 = vpop.permute.xlu0 %977  ;;  %v1062_v3 = vsub.f32 1.0, %v1061_v2 }
 0x2d5   : > { %v983_v31 = vsel %vm795_vm2, %v978_v30, 0  ;;  %1423 = vst.msk [vmem:[%s2054_s20 + $0x8] sm:$0xf] %vm790_vm3, %v915_v29  ;;  %v1483_v30 = vld [vmem:[%s2184_s13 + $0x18] sm:$0xff] }
 0x2d6   : > { %992 = vmatpush.bf16.msra.mxu2 %v983_v31  ;;  %v1063_v5 = vmul.f32 %v1598_v1, %v1062_v3  ;;  %1173 = vmatpush.bf16.msrb.mxu1 %v1483_v30  ;;  %v1482_v31 = vld [vmem:[%s2184_s13 + $0x10] sm:$0xff] }
 0x2d8   : > { %v1064_v6 = vadd.f32 %v1598_v1, %v1063_v5 }
 0x2d9   : > { %1427 = vmatmul.msk.bf16.vlgmr.msra.gmra.mxu2 %vm758_vm1, %v974_v25  ;;  %v1576_v25 = vld [vmem:[%s2181_s10] ss:$0 sm:$0xff] }
 0x2da   : > { %v2081_v7 = vsel %vm1065_vm6, %v1598_v1, %v1064_v6  ;;  %1174 = vmatpush.bf16.msrb.mxu1 %v1482_v31 }
 0x2e1   : > { %v919_v32 = vpop.permute.xlu1 %918 }
 0x2e2   : > { %v924_v33 = vsel %vm795_vm2, %v919_v32, 0  ;;  %v1481_v32 = vld [vmem:[%s2184_s13 + $0x8] sm:$0xff] }
 0x2e3   : > { %933 = vmatpush.bf16.msra.mxu0 %v924_v33  ;;  %1175 = vmatpush.bf16.msrb.mxu1 %v1481_v32  ;;  %v1480_v33 = vld [vmem:[%s2184_s13] sm:$0xff] }
 0x2e6   : > { %1424 = vmatmul.msk.bf16.vlgmr.msra.gmra.mxu0 %vm758_vm1, %v915_v29 }
 0x2e7   : > { %1120 = vmatpush.bf16.msrb.mxu0 %v1479_v12  ;;  %1176 = vmatpush.bf16.msrb.mxu1 %v1480_v33 }
 0x2eb   : > { %1121 = vmatpush.bf16.msrb.mxu0 %v1478_v13 }
 0x340   : > { %v876_v34 = vpop.f32.mrf.mxu2 }
 0x341   : > { %v880_v35 = vpack.c.bf16 %v876_v34, %v876_v34  ;;  %v1577_v34 = vld [vmem:[%s2183_s12] ss:$0 sm:$0xff] }
 0x343   : > { %v1000_v36 = vunpack.c.l.b16 %v880_v35 }
 0x345   : > { %v1001_v37 = vpack.c.b16 %v1000_v36, %v1000_v36 }
 0x347   : > { %1002 = vrot.lane.b32.xlu2 %v1001_v37, %s1807_s21 }
 0x348   : > { %v878_v38 = vpop.f32.mrf.mxu2 }
 0x35c   : > { %v994_v39 = vpop.f32.mrf.mxu2 }
 0x35d   : > { %v998_v40 = vpack.c.bf16 %v994_v39, %v994_v39 }
 0x35f   : > { %v1010_v41 = vunpack.c.l.b16 %v998_v40 }
 0x361   : > { %v1011_v42 = vpack.c.b16 %v1010_v41, %v1010_v41 }
 0x363   : > { %v935_v43 = vpop.f32.mrf.mxu0  ;;  %1012 = vrot.lane.b32.xlu2 %v1011_v42, %s1808_s7  ;;  %s1247_s7 = scalar_lea.hbm %s2189_s18, %s1484_s24 }
 0x364   : > { %v939_v44 = vpack.c.bf16 %v935_v43, %v935_v43  ;;  %v996_v45 = vpop.f32.mrf.mxu2 }
 0x366   : > { %v1005_v46 = vunpack.c.l.b16 %v939_v44 }
 0x368   : > { %v1006_v47 = vpack.c.b16 %v1005_v46, %v1005_v46 }
 0x36a   : > { %1007 = vrot.lane.b32.xlu0 %v1006_v47, %s1809_s5  ;;  %s1250_s5 = sshll.u32 %s1247_s7, 4  ;;  %s1251_s5 = int_to_ptr.hbm [resolvable:$true] %s1250_s5 }
 0x36b   : > { %v937_v48 = vpop.f32.mrf.mxu0  ;;  %s1709_s27 = sshra.s32 %s1251_s5, 4  ;;  %s1710_s27 = int_to_ptr.hbm [resolvable:$true] %s1709_s27 }
 0x36c   : > { %v1578_v48 = vld [vmem:[%s2185_s14] ss:$0 sm:$0xff]  ;;  %s1711_s29 = scalar_lea.hbm %s1710_s27, 16  ;;  %p1716_p3 = scmp.lt.s32.totalorder %s1710_s27, %s2189_s18 }
 0x36d   : > { %p1712_p0 = scmp.ne.s32.totalorder %s1710_s27, %s1711_s29  ;;  %p1717_p4 = scmp.lt.s32.totalorder %s1715_s22, %s1711_s29 }
 0x36f   : > { %p1713_p1 = pnand %p1712_p0, %p1946_p5  ;;  %p1718_p7 = por %p1717_p4, %p1716_p3 }
 0x371   : > { %p1714_p2 = pneg %p1713_p1 }
 0x373   : > { %p1719_p8 = pnand %p1718_p7, %p1714_p2 }
 0x3a1   : > { %v1003_v51 = vpop.permute.xlu2 %1002 }
 0x3a2   : > { %v1016_v53 = vsel %vm758_vm1, %v812_v52, %v1003_v51 }
 0x3bd   : > { %v1013_v55 = vpop.permute.xlu2 %1012 }
 0x3dc   : > { %v1008_v54 = vpop.permute.xlu0 %1007 }
 0x3dd   : > { %v1019_v56 = vsel %vm1017_vm4, %v1016_v53, %v1008_v54 }
 0x3de   : > { %v1022_v57 = vsel %vm1020_vm5, %v1019_v56, %v1013_v55 }
 0x3df   : > { %1436 = vmatmul.msk.bf16.vlgmr.msra.gmra.mxu3 %vm679_vm0, %v1022_v57 }
 0x462   : > { %v1050_v59 = vpop.f32.mrf.mxu3 }
 0x463   : > { %v1051_v60 = vadd.f32 %v1574_v58, %v1050_v59 }
 0x465   : > { %v1054_v61 = vadd.f32 %v1051_v60, %v2011_v4 }
 0x467   : > { %v1057_v62 = vsel %vm679_vm0, %v1054_v61, 0.0 }
 0x468   : > { %1058 = vadd.xlane.f32.xlu1 %v1057_v62 }
 0x46a   : > { %v1052_v63 = vpop.f32.mrf.mxu3 }
 0x4db   : > { %v1059_v8 = vpop.xlane.xlu1 %1058 }
 0x4dc   : > { %v1067_v9 = vmul.f32 %v2081_v7, %v1059_v8 }
 0x4de   : > { %v1068_v10 = vsub.f32 %v1054_v61, %v1067_v9 }
 0x4e0   : > { %v1069_v11 = vmul.f32 %v1068_v10, %v1068_v10 }
 0x4e2   : > { %v1070_v4 = vsel %vm679_vm0, %v1069_v11, 0.0 }
 0x4e3   : > { %1071 = vadd.xlane.f32.xlu0 %v1070_v4 }
 0x556   : > { %v1072_v14 = vpop.xlane.xlu0 %1071 }
 0x557   : > { %v1073_v15 = vmul.f32 %v1072_v14, %v2081_v7 }
 0x559   : > { %v1074_v16 = vadd.f32 1e-05, %v1073_v15 }
 0x55b   : > { %1599 = vrsqrt.f32 %v1074_v16  ;;  %vm1081_vm8 = vweird.f32 %v1074_v16 }
 0x561   : > { %v1600_v17 = vpop.eup %1599 }
 0x562   : > { %v1076_v18 = vmul.f32 %v1600_v17, %v1074_v16  ;;  %vm1082_vm7 = vweird.f32 %v1600_v17 }
 0x563   : > { %vm1083_vm9 = vmor %vm1081_vm8, %vm1082_vm7 }
 0x564   : > { %v1077_v19 = vmul.f32 %v1600_v17, %v1076_v18 }
 0x566   : > { %v1078_v20 = vmul.f32 0.5, %v1077_v19 }
 0x568   : > { %v1079_v21 = vsub.f32 1.5, %v1078_v20 }
 0x56a   : > { %v1080_v22 = vmul.f32 %v1600_v17, %v1079_v21 }
 0x56c   : > { %v1084_v24 = vsel %vm1083_vm9, %v1600_v17, %v1080_v22 }
 0x56d   : > { %v1085_v26 = vmul.f32 %v1084_v24, %v1068_v10 }
 0x56f   : > { %v1089_v27 = vmul.f32 %v1575_v23, %v1085_v26 }
 0x571   : > { %v1093_v28 = vadd.f32 %v1576_v25, %v1089_v27 }
 0x573   : > { %v1094_v29 = vpack.c.bf16 %v1093_v28, %v1093_v28 }
 0x575   : > { %1445 = vmatmul.msk.bf16.vlgmr.msrb.gmra.mxu0 %vm679_vm0, %v1094_v29 }
 0x5f2   : > { %v1123_v35 = vpop.f32.mrf.mxu0 }
 0x5f3   : > { %v1124_v36 = vadd.f32 %v1577_v34, %v1123_v35 }
 0x5f5   : > { %v1128_v37 = vmul.f32 0.044715, %v1124_v36  ;;  %v1127_v44 = vmul.f32 0.5, %v1124_v36 }
 0x5f7   : > { %v1129_v38 = vmul.f32 %v1128_v37, %v1124_v36 }
 0x5f9   : > { %v1130_v39 = vmul.f32 %v1129_v38, %v1124_v36 }
 0x5fa   : > { %v1125_v40 = vpop.f32.mrf.mxu0 }
 0x5fb   : > { %v1131_v41 = vadd.f32 %v1130_v39, %v1124_v36 }
 0x5fd   : > { %v1132_v42 = vmul.f32 0.7978846, %v1131_v41 }
 0x5ff   : > { %1601 = vtanh.f32 %v1132_v42 }
 0x605   : > { %v1602_v43 = vpop.eup %1601 }
 0x606   : > { %v1134_v45 = vadd.f32 1.0, %v1602_v43 }
 0x608   : > { %v1135_v46 = vmul.f32 %v1134_v45, %v1127_v44 }
 0x60a   : > { %v1136_v47 = vpack.c.bf16 %v1135_v46, %v1135_v46 }
 0x60c   : > { %1462 = vmatmul.msk.bf16.vlgmr.msrb.gmra.mxu1 %vm1165_vm10, %v1136_v47 }
 0x689   : > { %v1178_v49 = vpop.f32.mrf.mxu1 }
 0x68a   : > { %v1179_v50 = vadd.f32 %v1578_v48, %v1178_v49 }
 0x68c   : > { %v1182_v51 = vadd.f32 %v1179_v50, %v1093_v28 }
 0x68e   : > { %v1185_v52 = vsel %vm679_vm0, %v1182_v51, 0.0 }
 0x68f   : > { %1186 = vadd.xlane.f32.xlu2 %v1185_v52 }
 0x691   : > { %v1180_v53 = vpop.f32.mrf.mxu1 }
 0x702   : > { %v1187_v54 = vpop.xlane.xlu2 %1186 }
 0x703   : > { %v1188_v55 = vmul.f32 %v1187_v54, %v2081_v7 }
 0x705   : > { %v1189_v56 = vsub.f32 %v1182_v51, %v1188_v55 }
 0x707   : > { %v1190_v57 = vmul.f32 %v1189_v56, %v1189_v56 }
 0x709   : > { %v1191_v58 = vsel %vm679_vm0, %v1190_v57, 0.0 }
 0x70a   : > { %1192 = vadd.xlane.f32.xlu1 %v1191_v58 }
 0x70b   : > { %1722 = shalt.err (!%p1719_p8)
}
 0x70c   : > { %s1811_s24 = smov 64   ;;  %s1812_s26 = smov 4   ;;  %v1579_v5 = vld [vmem:[%s2186_s15] ss:$0 sm:$0xff] }
 0x70d   : > { %1498 = dma.vmem_to_hbm [thread:$0]  (%p1946_p5), %s1249_s19, 256, %s1251_s5, %s1222_s16, %s1811_s24, %s1811_s24, %s1812_s26  }
 0x70e   : > { %s1387_s3 = sshll.u32 %s2050_s25, 3  ;;  %s1465_s21 = sshll.u32 %s1929_s0, 3 }
 0x70f   : > { %s1232_s16 = scalar_lea.hbm %s2188_s17, %s1465_s21  ;;  %s2220_s1 = sld [smem:[#allocation27_spill]] }
 0x710   : > { %s620_s0 = scalar_lea.vmem [#allocation8], %s1387_s3  ;;  %s1236_s20 = sshll.u32 %s1232_s16, 4  ;;  %s1237_s20 = int_to_ptr.hbm [resolvable:$true] %s1236_s20 }
 0x711   : > { %s1234_s22 = sshll.u32 %s620_s0, 4  ;;  %s1217_s24 = scalar_lea.sflag [#allocation4], %s2050_s25  ;;  %s1235_s22 = int_to_ptr.vmem [resolvable:$true] %s1234_s22 }
 0x712   : > { %s1737_s26 = sshra.s32 %s1237_s20, 4  ;;  %s1743_s3 = scalar_lea.hbm %s2188_s17, 16  ;;  %s1738_s26 = int_to_ptr.hbm [resolvable:$true] %s1737_s26 }
 0x713   : > { %s1739_s21 = scalar_lea.hbm %s1738_s26, 8  ;;  %p1744_p12 = scmp.lt.s32.totalorder %s1738_s26, %s2188_s17 }
 0x714   : > { %p1740_p9 = scmp.ne.s32.totalorder %s1738_s26, %s1739_s21  ;;  %p1745_p13 = scmp.lt.s32.totalorder %s1743_s3, %s1739_s21 }
 0x715   : > { %v1580_v8 = vld [vmem:[%s2220_s1] ss:$0 sm:$0xff] }
 0x716   : > { %p1741_p10 = pnand %p1740_p9, %p1946_p5  ;;  %p1746_p0 = por %p1745_p13, %p1744_p12 }
 0x718   : > { %p1742_p11 = pneg %p1741_p10 }
 0x71a   : > { %p1747_p1 = pnand %p1746_p0, %p1742_p11 }
 0x77d   : > { %v1193_v59 = vpop.xlane.xlu1 %1192 }
 0x77e   : > { %v1194_v60 = vmul.f32 %v1193_v59, %v2081_v7 }
 0x780   : > { %v1195_v61 = vadd.f32 1e-05, %v1194_v60 }
 0x782   : > { %1603 = vrsqrt.f32 %v1195_v61  ;;  %vm1202_vm12 = vweird.f32 %v1195_v61 }
 0x788   : > { %v1604_v62 = vpop.eup %1603 }
 0x789   : > { %v1197_v63 = vmul.f32 %v1604_v62, %v1195_v61  ;;  %vm1203_vm11 = vweird.f32 %v1604_v62 }
 0x78a   : > { %vm1204_vm13 = vmor %vm1202_vm12, %vm1203_vm11 }
 0x78b   : > { %v1198_v0 = vmul.f32 %v1604_v62, %v1197_v63 }
 0x78d   : > { %v1199_v1 = vmul.f32 0.5, %v1198_v0 }
 0x78f   : > { %v1200_v2 = vsub.f32 1.5, %v1199_v1 }
 0x791   : > { %v1201_v3 = vmul.f32 %v1604_v62, %v1200_v2 }
 0x793   : > { %v1205_v6 = vsel %vm1204_vm13, %v1604_v62, %v1201_v3 }
 0x794   : > { %v1206_v7 = vmul.f32 %v1205_v6, %v1189_v56 }
 0x796   : > { %v1210_v9 = vmul.f32 %v1579_v5, %v1206_v7 }
 0x798   : > { %v1214_v10 = vadd.f32 %v1580_v8, %v1210_v9 }
 0x79a   : > { %1215 = vst.msk [vmem:[%s620_s0] sm:$0xff] %vm679_vm0, %v1214_v10 }
 0x79b   : > { %1750 = shalt.err (!%p1747_p1)
}
 0x79c   : > { %1497 = dma.vmem_to_hbm [thread:$0]  (%p1946_p5), %s1235_s22, 128, %s1237_s20, %s1217_s24  }
 0x79d PF: > { %s2221_s25 = sld [smem:[#allocation17_spill]] }
 0x79e   : > { %s2222_s16 = sld [smem:[#allocation15_spill]] }
 0x7a3   : > { %p1524_p2 = scmp.ge.s32.totalorder %s2221_s25, 2 }
 0x7a4   : > { %s1265_s30 = sand.u32 1, %s2222_s16  }
 0x7a5   : > { %p1512_p3 = pnand %p1524_p2, %p1950_p6  ;;  %s1266_s1 = scalar_lea.sflag [#allocation4], %s1265_s30 }
 0x7a7   : > { %p1513_p4 = pneg %p1512_p3 }
 0x7a9   : > { %1776 = dma.done.wait (%p1513_p4), %s1266_s1, 128  }
 0x7aa   : > { %1778 = vsyncadd (%p1513_p4), %s1266_s1, 4294967168  ;;  %s1276_s0 = scalar_lea.sflag [#allocation10], %s1265_s30 }
 0x7ab   : > { %1780 = dma.done.wait (%p1513_p4), %s1276_s0, 256  }
 0x7ac   : > { %1782 = vsyncadd (%p1513_p4), %s1276_s0, 4294967040  ;;  %s2224_s30 = sld [smem:[#allocation18_spill]]  ;;  %s2227_s27 = smov %s1789_s28 }
 0x7ad   : > { %s2225_s26 = sld [smem:[#allocation16_spill]] }
 0x7ae   : > { %s2226_s29 = sld [smem:[#allocation19_spill]] }
 0x7b2   : > { %p34_p5 = scmp.ge.s32.totalorder %s2224_s30, 4  }
 0x7b3   : > { %s2228_s28 = smov %s2225_s26 }
 0x7b4   :  { %36 = sbr.rel (!%p34_p5) target bundleno = 15 (0xf), region = 156 }
 0x7b9   :  { %1282 = vsyncpa [#allocation3], 1 }
 0x7ba   :  { %1284 = vsyncpa [#allocation3 + $0x1], 1 }
 0x7bb   :  { %1285 = vsyncpa [#allocation6], 1 }
 0x7bc   :  { %1286 = vsyncpa [#allocation4], 1 }
 0x7bd   :  { %1288 = vsyncpa [#allocation4 + $0x1], 1 }
 0x7be   :  { %1289 = vsyncpa [#allocation10], 1 }
 0x7bf   :  { %1291 = vsyncpa [#allocation10 + $0x1], 1 }

</bundles_post_ra>
